<compile_context>
chip_gen: v5e
topology: v5e:2x2
jax: 0.10.0
libtpu: 0.0.40
codegen_flags: <defaults>
</compile_context>

<pallas_src>
import jax
import jax.numpy as jnp
from jax import lax
from jax.experimental import pallas as pl
from jax.experimental.pallas import tpu as pltpu

EPS = 1e-4          # TsLoss eps
TAU = 0.1           # snn temperature
T_SHARPEN = 0.25    # sharpen temperature -> exponent 4
NORM_EPS = 1e-12    # torch.nn.functional.normalize default eps


def _round_up(x, m):
    return ((x + m - 1) // m) * m


def _ts_loss_kernel(m_ref, z_ref, p_ref, suppT_ref, out_ref):
    """One (tm, D) batch tile of z/p against the resident pre-folded supports."""
    f32 = jnp.float32
    tm = z_ref.shape[0]
    inv_tau = f32(1.0 / TAU)
    norm_eps2 = f32(NORM_EPS * NORM_EPS)

    supp_t = suppT_ref[...]                                  # (D, n8) normalized+folded

    def logits(q_ref):
        q = q_ref[...]                                       # native dtype -> MXU directly
        qf = q.astype(f32)
        sumsq = jnp.sum(qf * qf, axis=1, keepdims=True)      # (tm, 1) f32
        raw = jnp.dot(q, supp_t, preferred_element_type=f32)  # (tm, n8) f32
        # normalize(q) @ S.T == (q @ S.T) * rsqrt(||q||^2); fold 1/tau in too.
        return raw * (lax.rsqrt(jnp.maximum(sumsq, norm_eps2)) * inv_tau)

    # ---- probs branch: only log-softmax is needed for -targets * log(probs).
    lp = logits(p_ref)
    lp_s = lp - jnp.max(lp, axis=1, keepdims=True)
    log_probs = lp_s - jnp.log(jnp.sum(jnp.exp(lp_s), axis=1, keepdims=True))

    # ---- targets branch: softmax -> sharpen(^4 as two squarings) -> renorm -> threshold.
    lz = logits(z_ref)
    ez = jnp.exp(lz - jnp.max(lz, axis=1, keepdims=True))
    ez2 = ez * ez
    ez4 = ez2 * ez2
    # softmax(x)^4 / sum(softmax(x)^4) == ez4 / sum(ez4); divide via EUP reciprocal.
    sharp = ez4 * pl.reciprocal(jnp.sum(ez4, axis=1, keepdims=True), approx=False)
    sharp = jnp.where(sharp < EPS, 0.0, sharp)               # targets[targets < eps] *= 0

    # loss_i = sum_j log(probs_ij ** (-targets_ij)) = sum_j -targets_ij * log_probs_ij
    per_row = jnp.sum(-sharp * log_probs, axis=1, keepdims=True)   # (tm, 1)

    # Mask rows of the ragged last grid tile (beyond the true batch size).
    row = pl.program_id(0) * tm + lax.broadcasted_iota(jnp.int32, (tm, 1), 0)
    per_row = jnp.where(row < m_ref[0], per_row, 0.0)

    # Lane-dense (8, 128) partial-sum tile; the wrapper finishes the mean.
    out_ref[...] = jnp.full((8, 128), jnp.sum(per_row), dtype=jnp.float32)


def _vmem_capacity_bytes():
    try:
        return int(pltpu.get_tpu_info().vmem_capacity_bytes)
    except Exception:
        return 64 * 1024 * 1024     # conservative fallback (v7x per-TC VMEM)


def _derive_tm(M, D, n8, itemsize, vmem_cap):
    # Pipelined VMEM: z + p tiles x 2 buffers in native dtype; resident
    # (double-buffered) supports and the tiny output tile are "fixed".
    # Give the pipeline ~40% of capacity; in-kernel f32 temporaries use the rest.
    pipeline_budget = int(vmem_cap * 0.40)
    per_row = 2 * 2 * D * itemsize
    fixed = 2 * D * n8 * itemsize + 2 * 8 * 128 * 4
    avail = max(pipeline_budget - fixed, per_row * 8)
    tm = (avail // per_row // 8) * 8
    tm = int(max(8, min(tm, 1024)))          # >=512-row tiles already near HBM roofline
    # Keep >= 2 grid blocks when the batch allows it so v7x's two TensorCores
    # both get work (harmless extra ~0.35us step on single-core v5e/v6e).
    tm = min(tm, max(8, _round_up(pl.cdiv(M, 2), 8)))
    return tm


def ts_loss(z, p, supp, *, tm=None):
    """TsLoss.forward(z, p, supp) with gather_supports=False."""
    M, D = z.shape
    N, Ds = supp.shape
    assert p.shape == (M, D) and Ds == D
    # Only the first 3*(N//8) support rows influence the result.
    assert N % 8 == 0 and N >= 8, "TsLoss fold requires num supports % 8 == 0"
    n8 = N // 8

    f32 = jnp.float32
    # Support prep hoisted out of the grid loop (tiny vs the batch traffic):
    # normalize rows in f32, fold the first three N//8 groups (column fold of
    # q @ S.T == q @ (row fold of S).T), transpose once to the MXU-canonical
    # (D, n8) RHS, and match the batch dtype so bf16 inputs stay bf16 on MXU.
    s = supp[:3 * n8].astype(f32)
    s = s * lax.rsqrt(jnp.maximum(jnp.sum(s * s, axis=1, keepdims=True),
                                  f32(NORM_EPS * NORM_EPS)))
    supp_fold_t = (s[:n8] + s[n8:2 * n8] + s[2 * n8:3 * n8]).T.astype(z.dtype)

    itemsize = jnp.dtype(z.dtype).itemsize
    vmem_cap = _vmem_capacity_bytes()
    if tm is None:
        tm = _derive_tm(M, D, n8, itemsize, vmem_cap)
    tm = max(8, _round_up(min(tm, _round_up(M, 8)), 8))
    g = pl.cdiv(M, tm)

    m_true = jnp.array([M], dtype=jnp.int32)   # SMEM scalar instead of functools.partial

    partials = pl.pallas_call(
        _ts_loss_kernel,
        out_shape=jax.ShapeDtypeStruct((8, 128 * g), jnp.float32),
        grid_spec=pltpu.PrefetchScalarGridSpec(
            num_scalar_prefetch=1,
            grid=(g,),
            in_specs=[
                # z / p batch tiles: native dtype, unpadded feature dim
                # (block last dim == full array dim satisfies the (8,128) rule);
                # ragged last tile masked in-kernel.
                pl.BlockSpec((tm, D), lambda i, m: (i, 0)),
                pl.BlockSpec((tm, D), lambda i, m: (i, 0)),
                # Pre-folded supports stay resident (constant block index).
                pl.BlockSpec((D, n8), lambda i, m: (0, 0)),
            ],
            out_specs=pl.BlockSpec((8, 128), lambda i, m: (0, i)),
        ),
        compiler_params=pltpu.CompilerParams(
            # Batch tiles are independent -> shard across TensorCores (v7x).
            dimension_semantics=("parallel",),
            vmem_limit_bytes=int(vmem_cap * 0.85),
        ),
    )(m_true, z, p, supp_fold_t)

    # One partial sum per block sits at column 128*i of row 0; contiguous pick.
    return jnp.sum(partials.reshape(8, g, 128)[0, :, 0]) / M


def ts_loss_ref(z, p, supp):
    """Pure-JAX reference implementing the torch algebra verbatim."""
    f32 = jnp.float32
    z, p, supp = z.astype(f32), p.astype(f32), supp.astype(f32)

    def normalize(x):
        n = jnp.sqrt(jnp.sum(x * x, axis=1, keepdims=True))
        return x / jnp.maximum(n, NORM_EPS)

    def snn(q, s):
        mtx = normalize(q) @ normalize(s).T
        n8 = mtx.shape[1] // 8
        folded = mtx[:, :n8] + mtx[:, n8:2 * n8] + mtx[:, 2 * n8:3 * n8]
        return jax.nn.softmax(folded / TAU, axis=1)

    probs = snn(p, supp)
    targets = snn(z, supp)
    sharp = targets ** (1.0 / T_SHARPEN)
    sharp = sharp / jnp.sum(sharp, axis=1, keepdims=True)
    sharp = jnp.where(sharp < EPS, 0.0, sharp)
    return jnp.mean(jnp.sum(jnp.log(probs ** (-sharp)), axis=1))


if __name__ == "__main__":
    key = jax.random.PRNGKey(0)
    kz, kp, ks = jax.random.split(key, 3)

    M, D, N = 8, 32, 64      # batch=8, hidden=32, 64 supports (N//8 = 8 classes)
    z = jax.random.normal(kz, (M, D), dtype=jnp.float32)
    p = jax.random.normal(kp, (M, D), dtype=jnp.float32)
    supp = jax.random.normal(ks, (N, D), dtype=jnp.float32)

    loss = jax.block_until_ready(ts_loss(z, p, supp))
    ref = jax.block_until_ready(ts_loss_ref(z, p, supp))
    assert jnp.allclose(loss, ref, rtol=1e-4, atol=1e-4), (loss, ref)
    print("KERNEL_OK")
</pallas_src>

<mosaic_0001>
module attributes {stable_mosaic.version = 11 : i64} {
  func.func @_ts_loss_kernel(%arg0: i32, %arg1: memref<1xi32, #tpu.memory_space<smem>>, %arg2: memref<8x32xf32, #tpu.memory_space<vmem>>, %arg3: memref<8x32xf32, #tpu.memory_space<vmem>>, %arg4: memref<32x8xf32, #tpu.memory_space<vmem>>, %arg5: memref<8x128xf32, #tpu.memory_space<vmem>>) attributes {dimension_semantics = [#tpu.dimension_semantics<parallel>], iteration_bounds = array<i64: 1>, scalar_prefetch = 1 : i64, scratch_operands = 0 : i64, tpu.core_type = #tpu.core_type<tc>, window_params = [{transform_indices = @transform_0, window_bounds = array<i64: 8, 32>}, {transform_indices = @transform_1, window_bounds = array<i64: 8, 32>}, {pipeline_mode = #tpu.pipeline_mode<synchronous>, transform_indices = @transform_2, window_bounds = array<i64: 32, 8>}, {transform_indices = @transform_3, window_bounds = array<i64: 8, 128>}]} {
    %c0 = arith.constant 0 : index
    %c0_0 = arith.constant 0 : index
    %0 = vector.load %arg4[%c0, %c0_0] : memref<32x8xf32, #tpu.memory_space<vmem>>, vector<32x8xf32>
    %c0_1 = arith.constant 0 : index
    %c0_2 = arith.constant 0 : index
    %1 = vector.load %arg3[%c0_1, %c0_2] : memref<8x32xf32, #tpu.memory_space<vmem>>, vector<8x32xf32>
    %2 = arith.mulf %1, %1 : vector<8x32xf32>
    %cst = arith.constant dense<0.000000e+00> : vector<8xf32>
    %3 = vector.multi_reduction <add>, %2, %cst [1] : vector<8x32xf32> to vector<8xf32>
    %4 = vector.shape_cast %3 : vector<8xf32> to vector<8x1xf32>
    %cst_3 = arith.constant dense<0.000000e+00> : vector<8x8xf32>
    %5 = tpu.matmul %1, %0, %cst_3 {dimension_numbers = #tpu.dot_dimension_numbers<[1], [0], [0], [1], [0, 0, 1, 1], [], []>} : vector<8x32xf32>, vector<32x8xf32>, vector<8x8xf32> -> vector<8x8xf32>
    %cst_4 = arith.constant 1.000000e-24 : f32
    %6 = vector.broadcast %cst_4 : f32 to vector<8x1xf32>
    %7 = arith.maximumf %4, %6 : vector<8x1xf32>
    %8 = math.rsqrt %7 : vector<8x1xf32>
    %cst_5 = arith.constant 1.000000e+01 : f32
    %9 = vector.broadcast %cst_5 : f32 to vector<8x1xf32>
    %10 = arith.mulf %8, %9 : vector<8x1xf32>
    %11 = vector.broadcast %10 : vector<8x1xf32> to vector<8x8xf32>
    %12 = arith.mulf %5, %11 : vector<8x8xf32>
    %cst_6 = arith.constant dense<0xFF800000> : vector<8xf32>
    %13 = vector.multi_reduction <maximumf>, %12, %cst_6 [1] : vector<8x8xf32> to vector<8xf32>
    %14 = vector.shape_cast %13 : vector<8xf32> to vector<8x1xf32>
    %15 = vector.broadcast %14 : vector<8x1xf32> to vector<8x8xf32>
    %16 = arith.subf %12, %15 : vector<8x8xf32>
    %17 = math.exp %16 : vector<8x8xf32>
    %cst_7 = arith.constant dense<0.000000e+00> : vector<8xf32>
    %18 = vector.multi_reduction <add>, %17, %cst_7 [1] : vector<8x8xf32> to vector<8xf32>
    %19 = vector.shape_cast %18 : vector<8xf32> to vector<8x1xf32>
    %20 = math.log %19 : vector<8x1xf32>
    %21 = vector.broadcast %20 : vector<8x1xf32> to vector<8x8xf32>
    %22 = arith.subf %16, %21 : vector<8x8xf32>
    %c0_8 = arith.constant 0 : index
    %c0_9 = arith.constant 0 : index
    %23 = vector.load %arg2[%c0_8, %c0_9] : memref<8x32xf32, #tpu.memory_space<vmem>>, vector<8x32xf32>
    %24 = arith.mulf %23, %23 : vector<8x32xf32>
    %cst_10 = arith.constant dense<0.000000e+00> : vector<8xf32>
    %25 = vector.multi_reduction <add>, %24, %cst_10 [1] : vector<8x32xf32> to vector<8xf32>
    %26 = vector.shape_cast %25 : vector<8xf32> to vector<8x1xf32>
    %cst_11 = arith.constant dense<0.000000e+00> : vector<8x8xf32>
    %27 = tpu.matmul %23, %0, %cst_11 {dimension_numbers = #tpu.dot_dimension_numbers<[1], [0], [0], [1], [0, 0, 1, 1], [], []>} : vector<8x32xf32>, vector<32x8xf32>, vector<8x8xf32> -> vector<8x8xf32>
    %cst_12 = arith.constant 1.000000e-24 : f32
    %28 = vector.broadcast %cst_12 : f32 to vector<8x1xf32>
    %29 = arith.maximumf %26, %28 : vector<8x1xf32>
    %30 = math.rsqrt %29 : vector<8x1xf32>
    %cst_13 = arith.constant 1.000000e+01 : f32
    %31 = vector.broadcast %cst_13 : f32 to vector<8x1xf32>
    %32 = arith.mulf %30, %31 : vector<8x1xf32>
    %33 = vector.broadcast %32 : vector<8x1xf32> to vector<8x8xf32>
    %34 = arith.mulf %27, %33 : vector<8x8xf32>
    %cst_14 = arith.constant dense<0xFF800000> : vector<8xf32>
    %35 = vector.multi_reduction <maximumf>, %34, %cst_14 [1] : vector<8x8xf32> to vector<8xf32>
    %36 = vector.shape_cast %35 : vector<8xf32> to vector<8x1xf32>
    %37 = vector.broadcast %36 : vector<8x1xf32> to vector<8x8xf32>
    %38 = arith.subf %34, %37 : vector<8x8xf32>
    %39 = math.exp %38 : vector<8x8xf32>
    %40 = arith.mulf %39, %39 : vector<8x8xf32>
    %41 = arith.mulf %40, %40 : vector<8x8xf32>
    %cst_15 = arith.constant dense<0.000000e+00> : vector<8xf32>
    %42 = vector.multi_reduction <add>, %41, %cst_15 [1] : vector<8x8xf32> to vector<8xf32>
    %43 = vector.shape_cast %42 : vector<8xf32> to vector<8x1xf32>
    %44 = tpu.reciprocal %43 : vector<8x1xf32> -> vector<8x1xf32>
    %45 = vector.broadcast %44 : vector<8x1xf32> to vector<8x8xf32>
    %46 = arith.mulf %41, %45 : vector<8x8xf32>
    %cst_16 = arith.constant 9.99999974E-5 : f32
    %47 = vector.broadcast %cst_16 : f32 to vector<8x8xf32>
    %48 = arith.cmpf olt, %46, %47 : vector<8x8xf32>
    %cst_17 = arith.constant 0.000000e+00 : f32
    %49 = vector.broadcast %cst_17 : f32 to vector<8x8xf32>
    %50 = arith.select %48, %49, %46 : vector<8x8xi1>, vector<8x8xf32>
    %cst_18 = arith.constant 0.000000e+00 : f32
    %51 = vector.broadcast %cst_18 : f32 to vector<8x8xf32>
    %52 = arith.subf %51, %50 : vector<8x8xf32>
    %53 = arith.mulf %52, %22 : vector<8x8xf32>
    %cst_19 = arith.constant dense<0.000000e+00> : vector<8xf32>
    %54 = vector.multi_reduction <add>, %53, %cst_19 [1] : vector<8x8xf32> to vector<8xf32>
    %55 = vector.shape_cast %54 : vector<8xf32> to vector<8x1xf32>
    %c8_i32 = arith.constant 8 : i32
    %56 = arith.muli %arg0, %c8_i32 : i32
    %57 = tpu.iota {dimensions = array<i32: 0>} : vector<8x1xi32>
    %58 = vector.broadcast %56 : i32 to vector<8x1xi32>
    %59 = arith.addi %58, %57 : vector<8x1xi32>
    %c0_20 = arith.constant 0 : index
    %60 = memref.load %arg1[%c0_20] : memref<1xi32, #tpu.memory_space<smem>>
    %61 = vector.broadcast %60 : i32 to vector<8x1xi32>
    %62 = arith.cmpi slt, %59, %61 : vector<8x1xi32>
    %cst_21 = arith.constant 0.000000e+00 : f32
    %63 = vector.broadcast %cst_21 : f32 to vector<8x1xf32>
    %64 = arith.select %62, %55, %63 : vector<8x1xi1>, vector<8x1xf32>
    %65 = vector.shape_cast %64 : vector<8x1xf32> to vector<1x8x1xf32>
    %cst_22 = arith.constant dense<0.000000e+00> : vector<1xf32>
    %66 = vector.multi_reduction <add>, %65, %cst_22 [1, 2] : vector<1x8x1xf32> to vector<1xf32>
    %67 = vector.shape_cast %66 : vector<1xf32> to vector<1x1x1xf32>
    %68 = vector.extract %67[0, 0, 0] : f32 from vector<1x1x1xf32>
    %69 = vector.broadcast %68 : f32 to vector<8x128xf32>
    %c0_23 = arith.constant 0 : index
    %c0_24 = arith.constant 0 : index
    %70 = vector.load %arg5[%c0_23, %c0_24] : memref<8x128xf32, #tpu.memory_space<vmem>>, vector<8x128xf32>
    tpu.vector_store %arg5[%c0_23, %c0_24], %69 {strides = array<i32>} : memref<8x128xf32, #tpu.memory_space<vmem>>, vector<8x128xf32>,
    return
  }
  func.func @transform_0(%arg0: i32, %arg1: memref<1xi32, #tpu.memory_space<smem>>) -> (i32, i32) {
    %c0_i32 = arith.constant 0 : i32
    %c0_i32_0 = arith.constant 0 : i32
    return %arg0, %c0_i32 : i32, i32
  }
  func.func @transform_1(%arg0: i32, %arg1: memref<1xi32, #tpu.memory_space<smem>>) -> (i32, i32) {
    %c0_i32 = arith.constant 0 : i32
    %c0_i32_0 = arith.constant 0 : i32
    return %arg0, %c0_i32 : i32, i32
  }
  func.func @transform_2(%arg0: i32, %arg1: memref<1xi32, #tpu.memory_space<smem>>) -> (i32, i32) {
    %c0_i32 = arith.constant 0 : i32
    %c0_i32_0 = arith.constant 0 : i32
    %c0_i32_1 = arith.constant 0 : i32
    return %c0_i32, %c0_i32_0 : i32, i32
  }
  func.func @transform_3(%arg0: i32, %arg1: memref<1xi32, #tpu.memory_space<smem>>) -> (i32, i32) {
    %c0_i32 = arith.constant 0 : i32
    %c0_i32_0 = arith.constant 0 : i32
    return %c0_i32, %arg0 : i32, i32
  }
}

</mosaic_0001>

<bundles_post_ra>
// kernel: tpu_custom_call.1
= control target key start
LH: loop header
LB: loop body
LE: loop exit
PB: predicated region body
PF: predicated region fallthrough
CT: control target
= control target key end

     0   :  { %vm23_vm0 = vcmask 261120   ;;  %s290_s0 = inlined_call_operand.<no memory space> [shape: s32[1], index: 0, kind: input, shape index: {}]   ;;  %s291_s1 = inlined_call_operand.vmem [shape: f32[8,32], index: 1, kind: input, shape index: {}]   ;;  %s292_s2 = inlined_call_operand.vmem [shape: f32[8,32], index: 2, kind: input, shape index: {}]   ;;  %s293_s3 = inlined_call_operand.vmem [shape: f32[32,8], index: 3, kind: input, shape index: {}]   ;;  %s294_s4 = inlined_call_operand.hbm [shape: f32[8,128], index: 4, kind: output, shape index: {}]  }
   0x1   :  { %v76_v0 = vld [vmem:[%s291_s1] sm:$0xff]  ;;  %v20_v1 = vld [vmem:[%s293_s3 + $0x18] sm:$0xff]  ;;  %v19_v2 = vld [vmem:[%s293_s3 + $0x10] sm:$0xff] }
   0x2   :  { %v77_v3 = vmul.f32 %v76_v0, %v76_v0  ;;  %96 = vmatpush.msra.mxu1 %v20_v1  ;;  %42 = vmatpush.msra.mxu0 %v20_v1  ;;  %v21_v4 = vld [vmem:[%s292_s2] sm:$0xff]  ;;  %v18_v5 = vld [vmem:[%s293_s3 + $0x8] sm:$0xff] }
   0x3   :  { %10 = vsyncpa [#allocation5], 0  ;;  %v17_v7 = vld [vmem:[%s293_s3] sm:$0xff]  ;;  %v22_v8 = vmul.f32 %v21_v4, %v21_v4  ;;  %vm63_vm4 = vcmask 64512   ;;  %vm159_vm14 = vcmask 7168   ;;  %s231_s26 = smov [#allocation4]  }
   0x4   :  { %v78_v6 = vsel %vm23_vm0, %v77_v3, 0.0  ;;  %97 = vmatpush.msra.mxu1 %v19_v2  ;;  %43 = vmatpush.msra.mxu0 %v19_v2  ;;  %s177_s27 = sshll.u32 %s231_s26, 4  ;;  %s178_s27 = int_to_ptr.vmem [resolvable:$true] %s177_s27 }
   0x5   :  { %79 = vadd.xlane.f32.xlu0 %v78_v6  ;;  %v24_v9 = vsel %vm23_vm0, %v22_v8, 0.0  ;;  %v156_v6 = vstv %s290_s0  ;;  %s179_s0 = sshll.u32 %s294_s4, 4  ;;  %s180_s0 = int_to_ptr.hbm [resolvable:$true] %s179_s0 }
   0x6   :  { %98 = vmatpush.msra.mxu1 %v18_v5  ;;  %44 = vmatpush.msra.mxu0 %v18_v5 }
   0x8   :  { %99 = vmatpush.msra.mxu1 %v17_v7  ;;  %45 = vmatpush.msra.mxu0 %v17_v7 }
   0x9   :  { %189 = vmatmul.msk.f32.vlgmr.msra.gmra.mxu1 %vm23_vm0, %v76_v0  ;;  %188 = vmatmul.msk.f32.vlgmr.msra.gmra.mxu0 %vm23_vm0, %v21_v4  ;;  %v151_v4 = vlaneseq }
   0xb   :  { %v152_v5 = vshrl.u32 %v151_v4, 7 }
   0xd   :  { %25 = vadd.xlane.f32.xlu0 %v24_v9  ;;  %vm157_vm13 = vcmp.lt.s32.totalorder %v152_v5, %v156_v6 }
  0x78   :  { %v80_v10 = vpop.xlane.xlu0 %79 }
  0x79   :  { %v104_v11 = vmax.f32 %v80_v10, 1e-24 }
  0x7b   :  { %193 = vrsqrt.f32 %v104_v11  ;;  %vm111_vm2 = vweird.f32 %v104_v11 }
  0x80   :  { %v26_v12 = vpop.xlane.xlu0 %25 }
  0x81   :  { %v194_v13 = vpop.eup %193  ;;  %v50_v14 = vmax.f32 %v26_v12, 1e-24 }
  0x82   :  { %v106_v15 = vmul.f32 %v194_v13, %v104_v11  ;;  %vm112_vm1 = vweird.f32 %v194_v13 }
  0x83   :  { %195 = vrsqrt.f32 %v50_v14  ;;  %vm113_vm3 = vmor %vm111_vm2, %vm112_vm1  ;;  %vm57_vm5 = vweird.f32 %v50_v14 }
  0x84   :  { %v107_v16 = vmul.f32 %v194_v13, %v106_v15 }
  0x86   :  { %v108_v17 = vmul.f32 0.5, %v107_v16  ;;  %v101_v23 = vpop.f32.mrf.mxu1  ;;  %v47_v31 = vpop.f32.mrf.mxu0 }
  0x88   :  { %v109_v18 = vsub.f32 1.5, %v108_v17 }
  0x89   :  { %v196_v19 = vpop.eup %195 }
  0x8a   :  { %v52_v20 = vmul.f32 %v196_v19, %v50_v14  ;;  %v110_v21 = vmul.f32 %v194_v13, %v109_v18  ;;  %vm58_vm6 = vweird.f32 %v196_v19 }
  0x8b   :  { %vm59_vm7 = vmor %vm57_vm5, %vm58_vm6 }
  0x8c   :  { %v53_v22 = vmul.f32 %v196_v19, %v52_v20  ;;  %v114_v24 = vsel %vm113_vm3, %v194_v13, %v110_v21 }
  0x8d   :  { %v115_v25 = vmul.f32 10.0, %v114_v24 }
  0x8e   :  { %v54_v26 = vmul.f32 0.5, %v53_v22 }
  0x8f   :  { %v116_v27 = vmul.f32 %v115_v25, %v101_v23 }
  0x90   :  { %v55_v28 = vsub.f32 1.5, %v54_v26 }
  0x91   :  { %v117_v29 = vsel %vm63_vm4, %v116_v27, -inf }
  0x92   :  { %118 = vmax.xlane.f32.xlu1 %v117_v29  ;;  %v56_v30 = vmul.f32 %v196_v19, %v55_v28 }
  0x94   :  { %v60_v32 = vsel %vm59_vm7, %v196_v19, %v56_v30 }
  0x95   :  { %v61_v33 = vmul.f32 10.0, %v60_v32 }
  0x97   :  { %v62_v34 = vmul.f32 %v61_v33, %v47_v31 }
  0x99   :  { %v64_v35 = vsel %vm63_vm4, %v62_v34, -inf }
  0x9a   :  { %65 = vmax.xlane.f32.xlu1 %v64_v35 }
 0x105   :  { %v119_v36 = vpop.xlane.xlu1 %118 }
 0x106   :  { %v120_v37 = vsub.f32 %v116_v27, %v119_v36 }
 0x108   :  { %v121_v38 = vmul.f32 1.442695, %v120_v37 }
 0x10a   :  { %197 = vpow2.f32 %v121_v38 }
 0x10d   :  { %v66_v39 = vpop.xlane.xlu1 %65 }
 0x10e   :  { %v67_v40 = vsub.f32 %v62_v34, %v66_v39 }
 0x110   :  { %v198_v41 = vpop.eup %197  ;;  %v68_v42 = vmul.f32 1.442695, %v67_v40 }
 0x111   :  { %v123_v43 = vmul.f32 %v198_v41, %v198_v41 }
 0x112   :  { %199 = vpow2.f32 %v68_v42 }
 0x113   :  { %v124_v44 = vmul.f32 %v123_v43, %v123_v43 }
 0x115   :  { %v125_v45 = vsel %vm63_vm4, %v124_v44, 0.0 }
 0x116   :  { %126 = vadd.xlane.f32.xlu2 %v125_v45 }
 0x118   :  { %v200_v46 = vpop.eup %199 }
 0x119   :  { %v70_v47 = vsel %vm63_vm4, %v200_v46, 0.0 }
 0x11e   :  { %71 = vadd.xlane.f32.xlu2 %v70_v47 }
 0x189   :  { %v127_v48 = vpop.xlane.xlu2 %126 }
 0x18a   :  { %201 = vrcp.f32 %v127_v48  ;;  %v139_v53 = vand.u32 2147483648, %v127_v48  ;;  %v137_v55 = vand.u32 2147483647, %v127_v48  ;;  %vm133_vm9 = vweird.f32 %v127_v48 }
 0x18c   :  { %v140_v58 = vor.u32 1.1754944e-38, %v139_v53  ;;  %vm138_vm11 = vcmp.eq.f32.partialorder %v137_v55, 8.507059e+37 }
 0x190   :  { %v202_v49 = vpop.eup %201 }
 0x191   :  { %v129_v50 = vmul.f32 %v202_v49, %v127_v48  ;;  %v72_v51 = vpop.xlane.xlu2 %71  ;;  %vm134_vm8 = vweird.f32 %v202_v49 }
 0x192   :  { %203 = vlog2.f32 %v72_v51  ;;  %vm135_vm10 = vmor %vm133_vm9, %vm134_vm8 }
 0x193   :  { %v130_v52 = vsub.f32 1.0, %v129_v50 }
 0x195   :  { %v131_v54 = vmul.f32 %v202_v49, %v130_v52 }
 0x197   :  { %v132_v56 = vadd.f32 %v202_v49, %v131_v54 }
 0x198   :  { %v204_v57 = vpop.eup %203 }
 0x199   :  { %v136_v59 = vsel %vm135_vm10, %v202_v49, %v132_v56  ;;  %v74_v61 = vmul.f32 0.6931472, %v204_v57 }
 0x19a   :  { %v141_v60 = vsel %vm138_vm11, %v140_v58, %v136_v59 }
 0x19b   :  { %v142_v62 = vmul.f32 %v141_v60, %v124_v44  ;;  %v75_v0 = vsub.f32 %v67_v40, %v74_v61 }
 0x19d   :  { %vm143_vm12 = vcmp.lt.f32.partialorder %v142_v62, 0.0001 }
 0x19e   :  { %v144_v63 = vsel %vm143_vm12, 0.0, %v142_v62 }
 0x19f   :  { %v145_v1 = vsub.f32 0.0, %v144_v63 }
 0x1a1   :  { %v146_v2 = vmul.f32 %v145_v1, %v75_v0 }
 0x1a3   :  { %v147_v3 = vsel %vm63_vm4, %v146_v2, 0.0 }
 0x1a4   :  { %148 = vadd.xlane.f32.xlu0 %v147_v3 }
 0x217   :  { %v149_v7 = vpop.xlane.xlu0 %148 }
 0x218   :  { %v158_v8 = vsel %vm157_vm13, %v149_v7, 0.0 }
 0x219   :  { %v160_v9 = vsel %vm159_vm14, %v158_v8, 0.0 }
 0x21a   :  { %161 = vadd.xlane.f32.xlu1 %v160_v9 }
 0x28d   :  { %v162_v10 = vpop.xlane.xlu1 %161 }
 0x28e   :  { %v163_v11 = vrot.slane %v162_v10, 4 }
 0x290   :  { %v164_v12 = vadd.f32 %v163_v11, %v162_v10 }
 0x292   :  { %v165_v13 = vrot.slane %v164_v12, 2 }
 0x294   :  { %v166_v14 = vadd.f32 %v165_v13, %v164_v12 }
 0x296   :  { %v167_v15 = vrot.slane %v166_v14, 1 }
 0x298   :  { %v168_v16 = vadd.f32 %v167_v15, %v166_v14 }
 0x29a   :  { %190 = vpush %v168_v16 }
 0x2cb   :  { %s191_s30 = spop %190 }
 0x2cc   :  { %v170_v17 = vstv %s191_s30 }
 0x2cd   :  { %171 = vst [vmem:[#allocation4] sm:$0xff] %v170_v17 }
 0x2ce   :  { %182 = dma.vmem_to_hbm [thread:$0]  %s178_s27, 128, %s180_s0, [#allocation5]  }
 0x2cf   :  { %229 = dma.done.wait [#allocation5], 128  }
 0x2d0   :  { %230 = vsyncadd [#allocation5], 4294967168 }
 0x2d1   :  { %187 = vsyncpa [#allocation5], 1 }

</bundles_post_ra>
